<compile_context>
chip_gen: v7x
topology: tpu7x:2x2x1
jax: 0.10.0
libtpu: 0.0.40
codegen_flags: <defaults>
</compile_context>

<pallas_src>
import functools

import jax
import jax.numpy as jnp
from jax.experimental import pallas as pl
from jax.experimental.pallas import tpu as pltpu

LANES = 128
_SUBLANES = 8


def _round_up(x, m):
    return (x + m - 1) // m * m


# ---------------------------------------------------------------------------
# Fused kernel: policy / value / constraint heads in 3 matmuls, 1 dense store.
# Works for any row count M (single-state M=1 or a batched tile M=TM).
# ---------------------------------------------------------------------------
def _fused_kernel(state_ref, params_ref, out_ref, *, action_dim):
    r_p1 = state_ref.shape[1]                      # padded state_dim+1 (mult of 8)

    s = state_ref[...]                             # (M, r_p1), carry lane == 1
    p1 = params_ref[0:r_p1, :]                     # (r_p1, 128)  [pw1|vw1|cw1 + bias row]
    p2 = params_ref[r_p1:r_p1 + LANES, :]          # (128, 128)   block-diag layer 2
    p3 = params_ref[r_p1 + LANES:r_p1 + 2 * LANES, :]   # (128, 128) block-diag layer 3

    # Layer 1 (all three heads), bias via the carry lane, shared ReLU.
    h1 = jnp.maximum(jnp.dot(s, p1, preferred_element_type=jnp.float32), 0.0)
    # Layer 2: policy/value hidden-2, constraint output as +/- pair, carry lane.
    h2 = jnp.maximum(jnp.dot(h1, p2, preferred_element_type=jnp.float32), 0.0)
    # Layer 3: lanes 0:A logits, lane A value, lane A+1 relu(u)-relu(-u) = constraint.
    out3 = jnp.dot(h2, p3, preferred_element_type=jnp.float32)     # (M, 128)

    # Softmax over the A real logit lanes only (padded lanes masked out).
    lane = jax.lax.broadcasted_iota(jnp.int32, out3.shape, 1)
    is_logit = lane < action_dim
    m = jnp.max(jnp.where(is_logit, out3, -jnp.inf), axis=-1, keepdims=True)
    e = jnp.where(is_logit, jnp.exp(out3 - m), 0.0)        # no exp(-inf) reliance
    denom = jnp.sum(e, axis=-1, keepdims=True)
    probs = e / denom          # exact divide keeps the 1e-5 tolerance

    out_ref[...] = jnp.where(is_logit, probs, out3)        # single lane-dense store


# ---------------------------------------------------------------------------
# Parameter construction (mirrors nn.init.orthogonal_(gain=0.01), zero biases).
# ---------------------------------------------------------------------------
def _init_linear(key, in_dim, out_dim, gain=0.01):
    w = jax.nn.initializers.orthogonal(scale=gain)(key, (in_dim, out_dim), jnp.float32)
    b = jnp.zeros((out_dim,), jnp.float32)
    return w, b


def init_params(key, state_dim, action_dim, hidden):
    ks = jax.random.split(key, 8)
    pw1, pb1 = _init_linear(ks[0], state_dim, hidden)
    pw2, pb2 = _init_linear(ks[1], hidden, hidden)
    pw3, pb3 = _init_linear(ks[2], hidden, action_dim)
    vw1, vb1 = _init_linear(ks[3], state_dim, hidden)
    vw2, vb2 = _init_linear(ks[4], hidden, hidden)
    vw3, vb3 = _init_linear(ks[5], hidden, 1)
    cw1, cb1 = _init_linear(ks[6], state_dim, hidden)
    cw2, cb2 = _init_linear(ks[7], hidden, 1)
    return (pw1, pb1, pw2, pb2, pw3, pb3,
            vw1, vb1, vw2, vb2, vw3, vb3,
            cw1, cb1, cw2, cb2)


def pack_params(params, state_dim, action_dim, hidden):
    """Pack all weights/biases into one (r_p1 + 256, 128) f32 slab. Host-side, ONCE."""
    (pw1, pb1, pw2, pb2, pw3, pb3,
     vw1, vb1, vw2, vb2, vw3, vb3,
     cw1, cb1, cw2, cb2) = params
    H, A = hidden, action_dim
    assert H >= 2
    assert 3 * H + 1 <= LANES, "hidden too large for single-slab packing"
    assert A + 2 <= LANES
    carry = 3 * H                                      # constant-1 carry lane
    r_p1 = _round_up(state_dim + 1, _SUBLANES)         # state + carry lane, padded
    off_p2 = r_p1
    off_p3 = r_p1 + LANES
    total = off_p3 + LANES

    buf = jnp.zeros((total, LANES), jnp.float32)
    # ---- layer 1: columns [pw1 | vw1 | cw1]; bias folded into the carry row ----
    buf = buf.at[0:state_dim, 0:H].set(pw1)
    buf = buf.at[0:state_dim, H:2 * H].set(vw1)
    buf = buf.at[0:state_dim, 2 * H:3 * H].set(cw1)
    buf = buf.at[state_dim, 0:H].set(pb1)
    buf = buf.at[state_dim, H:2 * H].set(vb1)
    buf = buf.at[state_dim, 2 * H:3 * H].set(cb1)
    buf = buf.at[state_dim, carry].set(1.0)
    # ---- layer 2: block-diag pw2/vw2; constraint head packed as +/- (ReLU-safe) ----
    buf = buf.at[off_p2 + 0:off_p2 + H, 0:H].set(pw2)
    buf = buf.at[off_p2 + H:off_p2 + 2 * H, H:2 * H].set(vw2)
    buf = buf.at[off_p2 + 2 * H:off_p2 + 3 * H, 2 * H].set(cw2[:, 0])
    buf = buf.at[off_p2 + 2 * H:off_p2 + 3 * H, 2 * H + 1].set(-cw2[:, 0])
    buf = buf.at[off_p2 + carry, 0:H].set(pb2)
    buf = buf.at[off_p2 + carry, H:2 * H].set(vb2)
    buf = buf.at[off_p2 + carry, 2 * H].set(cb2[0])
    buf = buf.at[off_p2 + carry, 2 * H + 1].set(-cb2[0])
    buf = buf.at[off_p2 + carry, carry].set(1.0)
    # ---- layer 3: logits | value | constraint = relu(u) - relu(-u) ----
    buf = buf.at[off_p3 + 0:off_p3 + H, 0:A].set(pw3)
    buf = buf.at[off_p3 + H:off_p3 + 2 * H, A].set(vw3[:, 0])
    buf = buf.at[off_p3 + 2 * H, A + 1].set(1.0)
    buf = buf.at[off_p3 + 2 * H + 1, A + 1].set(-1.0)
    buf = buf.at[off_p3 + carry, 0:A].set(pb3)
    buf = buf.at[off_p3 + carry, A].set(vb3[0])
    return buf


def _pad_states(states, state_dim, r_p1):
    """(B, state_dim) -> (B, r_p1) with a constant-1 carry lane at column state_dim."""
    B = states.shape[0]
    pad = r_p1 - state_dim - 1
    return jnp.concatenate(
        [states.astype(jnp.float32),
         jnp.ones((B, 1), jnp.float32),
         jnp.zeros((B, pad), jnp.float32)], axis=1)


# ---------------------------------------------------------------------------
# Single-state forward: exact PyTorch `forward(state)` semantics (gridless,
# minimal per-call latency).
# ---------------------------------------------------------------------------
@functools.partial(jax.jit, static_argnames=("action_dim",))
def constrained_actor_critic_forward(state, packed_params, action_dim):
    state_flat = jnp.asarray(state, jnp.float32).reshape(1, -1)     # torch .flatten()
    state_dim = state_flat.shape[1]
    r_p1 = _round_up(state_dim + 1, _SUBLANES)
    x = _pad_states(state_flat, state_dim, r_p1)

    vmem = pl.BlockSpec(memory_space=pltpu.MemorySpace.VMEM)
    out_row = pl.pallas_call(
        functools.partial(_fused_kernel, action_dim=action_dim),
        out_shape=jax.ShapeDtypeStruct((1, LANES), jnp.float32),
        in_specs=[vmem, vmem],
        out_specs=vmem,
    )(x, packed_params)

    probs = out_row[0, :action_dim]
    value = out_row[0, action_dim:action_dim + 1]
    constraint = out_row[0, action_dim + 1:action_dim + 2]
    return probs, value, constraint                 # (A,), (1,), (1,) as in PyTorch


# ---------------------------------------------------------------------------
# Batched forward: grid over state tiles ("parallel" => both v7x TCs), the
# param slab index_map is constant so it is DMA'd once and stays VMEM-resident.
# ---------------------------------------------------------------------------
@functools.partial(jax.jit, static_argnames=("action_dim", "tm"))
def constrained_actor_critic_forward_batched(states, packed_params, action_dim, tm=8):
    B, state_dim = states.shape
    r_p1 = _round_up(state_dim + 1, _SUBLANES)
    total_rows = r_p1 + 2 * LANES
    b_pad = _round_up(B, tm)

    x = _pad_states(states, state_dim, r_p1)
    if b_pad > B:
        x = jnp.concatenate([x, jnp.zeros((b_pad - B, r_p1), jnp.float32)], axis=0)

    out = pl.pallas_call(
        functools.partial(_fused_kernel, action_dim=action_dim),
        out_shape=jax.ShapeDtypeStruct((b_pad, LANES), jnp.float32),
        grid_spec=pltpu.PrefetchScalarGridSpec(
            num_scalar_prefetch=0,
            grid=(b_pad // tm,),
            in_specs=[
                pl.BlockSpec((tm, r_p1), lambda i: (i, 0)),
                pl.BlockSpec((total_rows, LANES), lambda i: (0, 0)),   # resident slab
            ],
            out_specs=pl.BlockSpec((tm, LANES), lambda i: (i, 0)),
        ),
        compiler_params=pltpu.CompilerParams(dimension_semantics=("parallel",)),
    )(x, packed_params)

    probs = out[:B, :action_dim]
    value = out[:B, action_dim:action_dim + 1]
    constraint = out[:B, action_dim + 1:action_dim + 2]
    return probs, value, constraint


# ---------------------------------------------------------------------------
# Pure-JAX reference (unpacked params) for correctness check.
# ---------------------------------------------------------------------------
def _reference_forward_batched(states, params):
    (pw1, pb1, pw2, pb2, pw3, pb3,
     vw1, vb1, vw2, vb2, vw3, vb3,
     cw1, cb1, cw2, cb2) = params
    s = jnp.asarray(states, jnp.float32)
    relu = lambda x: jnp.maximum(x, 0.0)
    logits = relu(relu(s @ pw1 + pb1) @ pw2 + pb2) @ pw3 + pb3
    probs = jax.nn.softmax(logits, axis=-1)
    value = relu(relu(s @ vw1 + vb1) @ vw2 + vb2) @ vw3 + vb3
    constraint = relu(s @ cw1 + cb1) @ cw2 + cb2
    return probs, value, constraint


if __name__ == "__main__":
    STATE_DIM, ACTION_DIM, HIDDEN = 16, 8, 32

    key = jax.random.PRNGKey(0)
    k_state, k_params, k_batch = jax.random.split(key, 3)

    params = init_params(k_params, STATE_DIM, ACTION_DIM, HIDDEN)
    packed = pack_params(params, STATE_DIM, ACTION_DIM, HIDDEN)      # host-side, once

    # ---- single-state path (exact PyTorch forward: (4,4) flattens to STATE_DIM) ----
    state = jax.random.normal(k_state, (4, 4), jnp.float32)
    probs, value, constraint = constrained_actor_critic_forward(state, packed, ACTION_DIM)
    jax.block_until_ready((probs, value, constraint))

    ref_p, ref_v, ref_c = _reference_forward_batched(state.reshape(1, -1), params)
    assert probs.shape == (ACTION_DIM,) and value.shape == (1,) and constraint.shape == (1,)
    assert jnp.allclose(probs, ref_p[0], atol=1e-5)
    assert jnp.allclose(value, ref_v[0], atol=1e-5)
    assert jnp.allclose(constraint, ref_c[0], atol=1e-5)
    assert jnp.allclose(jnp.sum(probs), 1.0, atol=1e-5)

    # ---- batched path (grid over state tiles, resident param slab) ----
    B = 16
    states = jax.random.normal(k_batch, (B, STATE_DIM), jnp.float32)
    bp, bv, bc = constrained_actor_critic_forward_batched(states, packed, ACTION_DIM, tm=8)
    jax.block_until_ready((bp, bv, bc))

    rp, rv, rc = _reference_forward_batched(states, params)
    assert bp.shape == (B, ACTION_DIM) and bv.shape == (B, 1) and bc.shape == (B, 1)
    assert jnp.allclose(bp, rp, atol=1e-5)
    assert jnp.allclose(bv, rv, atol=1e-5)
    assert jnp.allclose(bc, rc, atol=1e-5)
    assert jnp.allclose(jnp.sum(bp, axis=-1), jnp.ones((B,)), atol=1e-5)

    print("KERNEL_OK")
</pallas_src>

<mosaic_0001>
module attributes {stable_mosaic.version = 11 : i64} {
  func.func @_fused_kernel(%arg0: memref<1x24xf32, #tpu.memory_space<vmem>>, %arg1: memref<280x128xf32, #tpu.memory_space<vmem>>, %arg2: memref<1x128xf32, #tpu.memory_space<vmem>>) attributes {dimension_semantics = [], scalar_prefetch = 0 : i64, scratch_operands = 0 : i64, tpu.core_type = #tpu.core_type<tc>} {
    %c0 = arith.constant 0 : index
    %c0_0 = arith.constant 0 : index
    %0 = vector.load %arg0[%c0, %c0_0] : memref<1x24xf32, #tpu.memory_space<vmem>>, vector<1x24xf32>
    %c0_1 = arith.constant 0 : index
    %c0_2 = arith.constant 0 : index
    %1 = vector.load %arg1[%c0_1, %c0_2] : memref<280x128xf32, #tpu.memory_space<vmem>>, vector<24x128xf32>
    %c24 = arith.constant 24 : index
    %c0_3 = arith.constant 0 : index
    %2 = vector.load %arg1[%c24, %c0_3] : memref<280x128xf32, #tpu.memory_space<vmem>>, vector<128x128xf32>
    %c152 = arith.constant 152 : index
    %c0_4 = arith.constant 0 : index
    %3 = vector.load %arg1[%c152, %c0_4] : memref<280x128xf32, #tpu.memory_space<vmem>>, vector<128x128xf32>
    %cst = arith.constant dense<0.000000e+00> : vector<1x128xf32>
    %4 = tpu.matmul %0, %1, %cst {dimension_numbers = #tpu.dot_dimension_numbers<[1], [0], [0], [1], [0, 0, 1, 1], [], []>} : vector<1x24xf32>, vector<24x128xf32>, vector<1x128xf32> -> vector<1x128xf32>
    %cst_5 = arith.constant 0.000000e+00 : f32
    %5 = vector.broadcast %cst_5 : f32 to vector<1x128xf32>
    %6 = arith.maximumf %4, %5 : vector<1x128xf32>
    %cst_6 = arith.constant dense<0.000000e+00> : vector<1x128xf32>
    %7 = tpu.matmul %6, %2, %cst_6 {dimension_numbers = #tpu.dot_dimension_numbers<[1], [0], [0], [1], [0, 0, 1, 1], [], []>} : vector<1x128xf32>, vector<128x128xf32>, vector<1x128xf32> -> vector<1x128xf32>
    %cst_7 = arith.constant 0.000000e+00 : f32
    %8 = vector.broadcast %cst_7 : f32 to vector<1x128xf32>
    %9 = arith.maximumf %7, %8 : vector<1x128xf32>
    %cst_8 = arith.constant dense<0.000000e+00> : vector<1x128xf32>
    %10 = tpu.matmul %9, %3, %cst_8 {dimension_numbers = #tpu.dot_dimension_numbers<[1], [0], [0], [1], [0, 0, 1, 1], [], []>} : vector<1x128xf32>, vector<128x128xf32>, vector<1x128xf32> -> vector<1x128xf32>
    %11 = tpu.iota {dimensions = array<i32: 1>} : vector<1x128xi32>
    %c8_i32 = arith.constant 8 : i32
    %12 = vector.broadcast %c8_i32 : i32 to vector<1x128xi32>
    %13 = arith.cmpi slt, %11, %12 : vector<1x128xi32>
    %cst_9 = arith.constant 0xFF800000 : f32
    %14 = vector.broadcast %cst_9 : f32 to vector<1x128xf32>
    %15 = arith.select %13, %10, %14 : vector<1x128xi1>, vector<1x128xf32>
    %cst_10 = arith.constant dense<0xFF800000> : vector<1xf32>
    %16 = vector.multi_reduction <maximumf>, %15, %cst_10 [1] : vector<1x128xf32> to vector<1xf32>
    %17 = vector.shape_cast %16 : vector<1xf32> to vector<1x1xf32>
    %18 = vector.broadcast %17 : vector<1x1xf32> to vector<1x128xf32>
    %19 = arith.subf %10, %18 : vector<1x128xf32>
    %20 = math.exp %19 : vector<1x128xf32>
    %cst_11 = arith.constant 0.000000e+00 : f32
    %21 = vector.broadcast %cst_11 : f32 to vector<1x128xf32>
    %22 = arith.select %13, %20, %21 : vector<1x128xi1>, vector<1x128xf32>
    %cst_12 = arith.constant dense<0.000000e+00> : vector<1xf32>
    %23 = vector.multi_reduction <add>, %22, %cst_12 [1] : vector<1x128xf32> to vector<1xf32>
    %24 = vector.shape_cast %23 : vector<1xf32> to vector<1x1xf32>
    %25 = vector.broadcast %24 : vector<1x1xf32> to vector<1x128xf32>
    %26 = arith.divf %22, %25 : vector<1x128xf32>
    %27 = arith.select %13, %26, %10 : vector<1x128xi1>, vector<1x128xf32>
    %c0_13 = arith.constant 0 : index
    %c0_14 = arith.constant 0 : index
    %28 = vector.load %arg2[%c0_13, %c0_14] : memref<1x128xf32, #tpu.memory_space<vmem>>, vector<1x128xf32>
    tpu.vector_store %arg2[%c0_13, %c0_14], %27 {strides = array<i32>} : memref<1x128xf32, #tpu.memory_space<vmem>>, vector<1x128xf32>,
    return
  }
}

</mosaic_0001>

<bundles_post_ra>
// kernel: constrained_actor_critic_forward.1
= control target key start
LH: loop header
LB: loop body
LE: loop exit
PB: predicated region body
PF: predicated region fallthrough
CT: control target
= control target key end

     0   :  { %7 = vsyncpa [#allocation3], 0  ;;  %s504_s9 = smov [#allocation2]   ;;  %s566_s0 = inlined_call_operand.vmem [shape: f32[1,24], index: 0, kind: input, shape index: {}]   ;;  %s567_s1 = inlined_call_operand.hbm [shape: f32[280,128], index: 1, kind: input, shape index: {}]   ;;  %s568_s2 = inlined_call_operand.vmem [shape: f32[1,128], index: 2, kind: output, shape index: {}]  }
   0x1   :  { %s15_s10 = sshll.u32 %s504_s9, 4  ;;  %s480_s13 = scalar_lea.hbm %s567_s1, 4480  ;;  %s16_s10 = int_to_ptr.vmem [resolvable:$true] %s15_s10 }
   0x2   :  { %p481_p0 = scmp.ne.s32.totalorder %s567_s1, %s480_s13  ;;  %p484_p1 = scmp.lt.u32.totalorder %s480_s13, %s567_s1 }
   0x4   :  { %p486_p2 = pnand %p484_p1, %p481_p0 }
   0x6   :  { %489 = shalt.err (!%p486_p2)
}
   0x7   :  { %s490_s18 = scalar_lea.vmem %s16_s10, 4480  ;;  %p495_p4 = scmp.lt.s32.totalorder %s16_s10, %s16_s10 }
   0x8   :  { %p491_p3 = scmp.ne.s32.totalorder %s16_s10, %s490_s18  ;;  %p496_p5 = scmp.lt.s32.totalorder %s490_s18, %s490_s18 }
   0xa   :  { %p497_p6 = por %p496_p5, %p495_p4 }
   0xc   :  { %p498_p7 = pnand %p497_p6, %p491_p3 }
   0xe   :  { %501 = shalt.err (!%p498_p7)
}
   0xf   :  { %s505_s19 = smov 128   ;;  %s506_s20 = smov 8  }
  0x10   :  { %21 = dma.hbm_to_vmem [thread:$0]  %s567_s1, 4480, %s16_s10, [#allocation3], %s505_s19, %s505_s19, %s506_s20  }
  0x11   :  { %502 = dma.done.wait [#allocation3], 4480  }
  0x12   :  { %503 = vsyncadd [#allocation3], 4294962816  ;;  %v507_v0 = vmov 0.0|0.0   ;;  %vm508_vm0 = vmmov 0   ;;  %v509_v1 = vmov 0.0   ;;  %v26_v2 = vld [vmem:[#allocation2] sm:$0xff]  ;;  %v277_v61 = vlaneseq }
  0x13   :  { %419 = vmatprep.subr.bf16.mxu0 %v507_v0  ;;  %346 = vmatprep.mubr.msk.f32.mxu0 %vm508_vm0, %v509_v1  ;;  %v27_v3 = vld [vmem:[#allocation2 + $0x8] sm:$0xff]  ;;  %v29_v5 = vld [vmem:[#allocation2 + $0x18] sm:$0xff]  ;;  %v30_v6 = vld [vmem:[#allocation2 + $0x20] sm:$0xff]  ;;  %vm61_vm1 = vcmask 195584   ;;  %vm281_vm3 = vcmask 1040384  }
  0x14   :  { %422 = vmatprep.subr.bf16.mxu1 %v507_v0  ;;  %381 = vmatprep.mubr.msk.f32.mxu1 %vm508_vm0, %v509_v1  ;;  %v420_v4 = vpack.c.bf16 %v27_v3, %v26_v2  ;;  %v423_v7 = vpack.c.bf16 %v30_v6, %v29_v5  ;;  %v31_v8 = vld [vmem:[#allocation2 + $0x28] sm:$0xff]  ;;  %v32_v9 = vld [vmem:[#allocation2 + $0x30] sm:$0xff]  ;;  %v25_v12 = vld [vmem:[%s566_s0] sm:$0x1]  ;;  %v278_v62 = vand.u32 127, %v277_v61 }
  0x15   :  { %v28_v10 = vld [vmem:[#allocation2 + $0x10] sm:$0xff]  ;;  %v426_v11 = vpack.c.bf16 %v32_v9, %v31_v8  ;;  %v33_v13 = vld [vmem:[#allocation2 + $0x38] sm:$0xff]  ;;  %v34_v14 = vld [vmem:[#allocation2 + $0x40] sm:$0xff] }
  0x16   :  { %421 = vmatpush3.bf16.msra.mxu0 %v420_v4  ;;  %424 = vmatpush3.bf16.msra.mxu1 %v423_v7  ;;  %v429_v15 = vpack.c.bf16 %v34_v14, %v33_v13  ;;  %v35_v16 = vld [vmem:[#allocation2 + $0x48] sm:$0xff]  ;;  %v36_v17 = vld [vmem:[#allocation2 + $0x50] sm:$0xff]  ;;  %v37_v19 = vld [vmem:[#allocation2 + $0x58] sm:$0xff]  ;;  %vm279_vm2 = vcmp.lt.s32.totalorder %v278_v62, 8 }
  0x17   :  { %344 = vmatprep.subr.mxu0 %v509_v1  ;;  %425 = vmatprep.subr.bf16.mxu1 %v507_v0  ;;  %v432_v18 = vpack.c.bf16 %v36_v17, %v35_v16  ;;  %v38_v20 = vld [vmem:[#allocation2 + $0x60] sm:$0xff]  ;;  %v39_v22 = vld [vmem:[#allocation2 + $0x68] sm:$0xff]  ;;  %v40_v23 = vld [vmem:[#allocation2 + $0x70] sm:$0xff] }
  0x18   :  { %v435_v21 = vpack.c.bf16 %v38_v20, %v37_v19  ;;  %v438_v24 = vpack.c.bf16 %v40_v23, %v39_v22  ;;  %v41_v25 = vld [vmem:[#allocation2 + $0x78] sm:$0xff]  ;;  %v42_v26 = vld [vmem:[#allocation2 + $0x80] sm:$0xff]  ;;  %v43_v28 = vld [vmem:[#allocation2 + $0x88] sm:$0xff] }
  0x19   :  { %v441_v27 = vpack.c.bf16 %v42_v26, %v41_v25  ;;  %v44_v29 = vld [vmem:[#allocation2 + $0x90] sm:$0xff]  ;;  %v45_v31 = vld [vmem:[#allocation2 + $0x98] sm:$0xff]  ;;  %v46_v32 = vld [vmem:[#allocation2 + $0xa0] sm:$0xff] }
  0x1a   :  { %345 = vmatpush3.msra.mxu0 %v28_v10  ;;  %427 = vmatpush3.bf16.msra.mxu1 %v426_v11  ;;  %v444_v30 = vpack.c.bf16 %v44_v29, %v43_v28  ;;  %v47_v33 = vld [vmem:[#allocation2 + $0xa8] sm:$0xff]  ;;  %v447_v34 = vpack.c.bf16 %v46_v32, %v45_v31  ;;  %v48_v35 = vld [vmem:[#allocation2 + $0xb0] sm:$0xff]  ;;  %v49_v37 = vld [vmem:[#allocation2 + $0xb8] sm:$0xff] }
  0x1b   :  { %347 = vmatmul.mubr.msk.f32.vlgmr.msra.gmra.mrb[0].mxu0 %vm61_vm1, %v25_v12  ;;  %428 = vmatprep.subr.bf16.mxu1 %v507_v0  ;;  %v450_v36 = vpack.c.bf16 %v48_v35, %v47_v33  ;;  %v50_v38 = vld [vmem:[#allocation2 + $0xc0] sm:$0xff]  ;;  %v51_v40 = vld [vmem:[#allocation2 + $0xc8] sm:$0xff]  ;;  %v52_v41 = vld [vmem:[#allocation2 + $0xd0] sm:$0xff] }
  0x1c   :  { %446 = vmatprep.subr.bf16.mxu0 %v507_v0  ;;  %416 = vmatprep.mubr.msk.f32.mxu0 %vm508_vm0, %v509_v1  ;;  %v453_v39 = vpack.c.bf16 %v50_v38, %v49_v37  ;;  %v456_v42 = vpack.c.bf16 %v52_v41, %v51_v40  ;;  %v53_v43 = vld [vmem:[#allocation2 + $0xd8] sm:$0xff]  ;;  %v54_v44 = vld [vmem:[#allocation2 + $0xe0] sm:$0xff]  ;;  %v55_v46 = vld [vmem:[#allocation2 + $0xe8] sm:$0xff] }
  0x1d   :  { %448 = vmatpush3.bf16.msra.mxu0 %v447_v34  ;;  %v459_v45 = vpack.c.bf16 %v54_v44, %v53_v43  ;;  %v56_v47 = vld [vmem:[#allocation2 + $0xf0] sm:$0xff]  ;;  %v57_v49 = vld [vmem:[#allocation2 + $0xf8] sm:$0xff]  ;;  %v58_v50 = vld [vmem:[#allocation2 + $0x100] sm:$0xff] }
  0x1e   :  { %430 = vmatpush3.bf16.msra.mxu1 %v429_v15  ;;  %449 = vmatprep.subr.bf16.mxu0 %v507_v0  ;;  %v462_v48 = vpack.c.bf16 %v56_v47, %v55_v46  ;;  %v465_v51 = vpack.c.bf16 %v58_v50, %v57_v49  ;;  %v59_v55 = vld [vmem:[#allocation2 + $0x108] sm:$0xff]  ;;  %v60_v56 = vld [vmem:[#allocation2 + $0x110] sm:$0xff] }
  0x1f   :  { %431 = vmatprep.subr.bf16.mxu1 %v507_v0  ;;  %v468_v57 = vpack.c.bf16 %v60_v56, %v59_v55 }
  0x21   :  { %451 = vmatpush3.bf16.msra.mxu0 %v450_v36 }
  0x22   :  { %433 = vmatpush3.bf16.msra.mxu1 %v432_v18  ;;  %452 = vmatprep.subr.bf16.mxu0 %v507_v0 }
  0x23   :  { %434 = vmatprep.subr.bf16.mxu1 %v507_v0 }
  0x25   :  { %454 = vmatpush3.bf16.msra.mxu0 %v453_v39 }
  0x26   :  { %436 = vmatpush3.bf16.msra.mxu1 %v435_v21  ;;  %455 = vmatprep.subr.bf16.mxu0 %v507_v0 }
  0x27   :  { %437 = vmatprep.subr.bf16.mxu1 %v507_v0 }
  0x29   :  { %457 = vmatpush3.bf16.msra.mxu0 %v456_v42 }
  0x2a   :  { %439 = vmatpush3.bf16.msra.mxu1 %v438_v24  ;;  %458 = vmatprep.subr.bf16.mxu0 %v507_v0 }
  0x2b   :  { %440 = vmatprep.subr.bf16.mxu1 %v507_v0 }
  0x2d   :  { %460 = vmatpush3.bf16.msra.mxu0 %v459_v45 }
  0x2e   :  { %442 = vmatpush3.bf16.msra.mxu1 %v441_v27  ;;  %461 = vmatprep.subr.bf16.mxu0 %v507_v0 }
  0x2f   :  { %443 = vmatprep.subr.bf16.mxu1 %v507_v0 }
  0x31   :  { %463 = vmatpush3.bf16.msra.mxu0 %v462_v48 }
  0x32   :  { %445 = vmatpush3.bf16.msra.mxu1 %v444_v30  ;;  %464 = vmatprep.subr.bf16.mxu0 %v507_v0 }
  0x35   :  { %466 = vmatpush3.bf16.msra.mxu0 %v465_v51 }
  0x36   :  { %467 = vmatprep.subr.bf16.mxu0 %v507_v0 }
  0x39   :  { %469 = vmatpush3.bf16.msra.mxu0 %v468_v57 }
  0xee   :  { %v131_v52 = vpop.f32.mrb[0].mxu0 }
  0xef   :  { %v135_v53 = vmax.f32 %v131_v52, 0.0  ;;  %v348_v54 = vpop.f32.mrb[1].mxu0 }
  0xf1   :  { %382 = vmatmul.mubr.f32.vlgmr.msra.gmra.mrb[0].mxu1 %v135_v53 }
 0x1c4   :  { %v202_v58 = vpop.f32.mrb[0].mxu1 }
 0x1c5   :  { %v206_v59 = vmax.f32 %v202_v58, 0.0  ;;  %v383_v60 = vpop.f32.mrb[1].mxu1 }
 0x1c7   :  { %417 = vmatmul.mubr.f32.vlgmr.msra.gmra.mrb[2].mxu0 %v206_v59 }
 0x29a   :  { %v273_v63 = vpop.f32.mrb[2].mxu0 }
 0x29b   :  { %v418_v1 = vpop.f32.mrb[3].mxu0  ;;  %v280_v0 = vsel %vm279_vm2, %v273_v63, -inf }
 0x29c   :  { %v282_v2 = vsel %vm281_vm3, %v280_v0, -inf }
 0x29d   :  { %283 = vmax.xlane.f32.xlu0 %v282_v2 }
 0x32a   :  { %v284_v3 = vpop.xlane.xlu0 %283 }
 0x32b   :  { %v285_v4 = vsub.f32 %v273_v63, %v284_v3 }
 0x32d   :  { %v286_v5 = vmul.f32 1.442695, %v285_v4 }
 0x32f   :  { %476 = vpow2.f32 %v286_v5 }
 0x339   :  { %v477_v6 = vpop.eup %476 }
 0x33a   :  { %v288_v7 = vsel %vm279_vm2, %v477_v6, 0.0 }
 0x33b   :  { %v289_v8 = vsel %vm281_vm3, %v288_v7, 0.0 }
 0x33c   :  { %290 = vadd.xlane.f32.xlu0 %v289_v8 }
 0x3c9   :  { %v291_v9 = vpop.xlane.xlu0 %290 }
 0x3ca   :  { %478 = vrcp.f32 %v291_v9 }
 0x3d4   :  { %v479_v10 = vpop.eup %478 }
 0x3d5   :  { %v293_v11 = vmul.f32 %v479_v10, %v288_v7 }
 0x3d7   :  { %v294_v12 = vsel %vm279_vm2, %v293_v11, %v273_v63 }
 0x3d8   :  { %295 = vst [vmem:[%s568_s2] sm:$0x1] %v294_v12 }
 0x3d9   :  { %300 = vsyncpa [#allocation3], 1 }

</bundles_post_ra>
